<compile_context>
chip_gen: v5e
topology: v5e:2x2
jax: 0.10.0
libtpu: 0.0.40
codegen_flags: <defaults>
</compile_context>

<pallas_src>
import jax
import jax.numpy as jnp
from jax.experimental import pallas as pl
from jax.experimental.pallas import tpu as pltpu

EPS = 1e-5


# ---------------------------------------------------------------------------
# Fused kernel
# ---------------------------------------------------------------------------
def make_fused_kernel(N, H, W, Co):
    NH = N * H
    WC = W * Co

    def kernel(x_ref, w1x1_ref, w2_ref, vec_ref, p_ref, o_ref):
        # x:    [N*H, W*Cin]        lane layout, rows=(n,h), lanes=(w,c)
        # w1x1: [W*Cin, 2*W*Co]     concat(kron(I_W, w1), kron(I_W, wsc))
        # w2:   [3*W*Co, W*Co]      per-dh blocks (dw shift + pad folded in)
        # vec:  [8, W*Co]           lane-tiled g1,be1,g2,be2,bsc,0,0,0
        # p:    [W*Co, W*Co]        per-channel sum/broadcast, pre * 1/(NHW)
        # o:    [N*H, W*Co]
        x = x_ref[...]
        P = p_ref[...]
        vec = vec_ref[...]
        g1, be1 = vec[0:1], vec[1:2]
        g2, be2, bsc = vec[2:3], vec[3:4], vec[4:5]

        def bn(y, g, be):
            # One-pass train-mode batch stats (biased var): sum(y) and
            # sum(y*y) are independent, so there is no mean->centered->var
            # serialization; ONE [2,WC] @ P matmul sums over the W lane
            # groups, broadcasts back, and divides by N*H*W (P pre-scaled).
            sums = jnp.sum(jnp.stack([y, y * y], axis=0), axis=1)   # [2, WC]
            stats = jnp.dot(sums, P, preferred_element_type=jnp.float32)
            mean = stats[0:1]
            var = stats[1:2] - mean * mean
            return (y - mean) * jax.lax.rsqrt(var + EPS) * g + be

        # ---- conv1 (1x1) + shortcut 1x1: ONE fused MXU matmul --------------
        h = jnp.dot(x, w1x1_ref[...], preferred_element_type=jnp.float32)
        h1 = jnp.maximum(bn(h[:, :WC], g1, be1), 0.0)   # conv1 -> BN1 -> ReLU
        sc = h[:, WC:] + bsc                            # shortcut projection

        # ---- conv2 (3x3, padding=1) ----------------------------------------
        # dh row shifts on the XLU (sublane roll) + height-boundary masks;
        # dw shifts / width zero padding are folded into the precomputed w2
        # blocks; all three dh taps collapse into ONE K=3*WC matmul.
        rows = jax.lax.broadcasted_iota(jnp.int32, (NH, WC), 0)
        up = jnp.where(rows % H == 0, 0.0,
                       pltpu.roll(h1, shift=1, axis=0))        # row r <- r-1
        dn = jnp.where(rows % H == H - 1, 0.0,
                       pltpu.roll(h1, shift=NH - 1, axis=0))   # row r <- r+1
        acc = jnp.dot(jnp.concatenate([up, h1, dn], axis=1), w2_ref[...],
                      preferred_element_type=jnp.float32)

        # ---- BN2 + shortcut add + ReLU --------------------------------------
        o_ref[...] = jnp.maximum(bn(acc, g2, be2) + sc, 0.0)

    return kernel


# ---------------------------------------------------------------------------
# Parameter preparation (one-time, plain JAX)
# ---------------------------------------------------------------------------
def prepare_params(params, N, H, W):
    Cin, Co = params['w1'].shape
    f32 = jnp.float32
    eye_w = jnp.eye(W, dtype=f32)

    # conv1 and shortcut 1x1 as block-diagonal kron weights, concatenated so
    # the kernel computes both with ONE [N*H, W*Cin] @ [W*Cin, 2*W*Co] matmul.
    w1b = jnp.kron(eye_w, params['w1'].astype(f32))          # [W*Cin, W*Co]
    wscb = jnp.kron(eye_w, params['wsc'].astype(f32))        # [W*Cin, W*Co]
    w1x1 = jnp.concatenate([w1b, wscb], axis=1)              # [W*Cin, 2*W*Co]

    # 3x3 conv: for each dh, sum the three dw taps into one [W*Co, W*Co]
    # block (kron(eye(W, k=1-dw), w2[dh,dw]) encodes lane shift + width pad);
    # stack along K so the kernel issues ONE K=3*W*Co matmul.
    w2b = jnp.concatenate([
        sum(jnp.kron(jnp.eye(W, k=1 - dw, dtype=f32),
                     params['w2'][dh, dw].astype(f32))
            for dw in range(3))
        for dh in range(3)], axis=0)                          # [3*W*Co, W*Co]

    # per-channel sum / broadcast matrix for BN batch statistics, pre-scaled
    # by 1/(N*H*W) so the kernel needs no extra VPU multiplies.
    p = jnp.kron(jnp.ones((W, W), f32),
                 jnp.eye(Co, dtype=f32)) * (1.0 / float(N * H * W))

    def lane(v):                                              # [*, Co] -> [1, W*Co]
        return jnp.tile(jnp.asarray(v, f32).reshape(1, Co), (1, W))

    # b1 / b2 dropped: per-channel constants immediately followed by
    # train-mode BN whose mean subtraction cancels them exactly.
    vec = jnp.concatenate([
        lane(params['g1']), lane(params['be1']),
        lane(params['g2']), lane(params['be2']),
        lane(params['bsc']),
        jnp.zeros((3, W * Co), f32)], axis=0)                 # [8, W*Co]

    return dict(w1x1=w1x1, w2b=w2b, vec=vec, p=p)


# ---------------------------------------------------------------------------
# Forward
# ---------------------------------------------------------------------------
def residual_block1_lane(x_lane, prep, N, H, W):
    """Lane-layout entry point ([N*H, W*Cin] -> [N*H, W*Cout]). Use this when
    chaining blocks so the NCHW<->lane transposes happen once per network."""
    Co = prep['w2b'].shape[1] // W
    return pl.pallas_call(
        make_fused_kernel(N, H, W, Co),
        out_shape=jax.ShapeDtypeStruct((N * H, W * Co), jnp.float32),
        cost_estimate=pl.CostEstimate(flops=5_000_000, transcendentals=512,
                                      bytes_accessed=360_000),
    )(x_lane, prep['w1x1'], prep['w2b'], prep['vec'], prep['p'])


@jax.jit
def residual_block1_forward(x_nchw, prep):
    # NCHW in / NCHW out — matches the PyTorch module contract.
    # TODO(synk): no grid -> single TensorCore; for large batches add a batch
    # grid axis plus a cross-core BN-stats reduction to use both v7x cores.
    N, Cin, H, W = x_nchw.shape
    Co = prep['w2b'].shape[1] // W
    x_lane = jnp.transpose(x_nchw, (0, 2, 3, 1)).reshape(N * H, W * Cin)
    out_lane = residual_block1_lane(x_lane, prep, N, H, W)
    return jnp.transpose(out_lane.reshape(N, H, W, Co), (0, 3, 1, 2))


# ---------------------------------------------------------------------------
# Pure-JAX reference (correctness check only)
# ---------------------------------------------------------------------------
def ref_forward(x_nchw, params):
    x = jnp.transpose(x_nchw, (0, 2, 3, 1))
    Cin = x.shape[-1]
    Cout = params['w1'].shape[1]

    def conv(inp, w, b, padding):
        y = jax.lax.conv_general_dilated(
            inp, w, (1, 1), padding,
            dimension_numbers=('NHWC', 'HWIO', 'NHWC'))
        return y + b

    def bn(y, g, be):
        mean = jnp.mean(y, axis=(0, 1, 2), keepdims=True)
        var = jnp.mean((y - mean) ** 2, axis=(0, 1, 2), keepdims=True)
        return (y - mean) * jax.lax.rsqrt(var + EPS) * g + be

    w1 = params['w1'].reshape(1, 1, Cin, Cout)
    wsc = params['wsc'].reshape(1, 1, Cin, Cout)
    out = jnp.maximum(bn(conv(x, w1, params['b1'], 'VALID'),
                         params['g1'], params['be1']), 0.0)
    out = bn(conv(out, params['w2'], params['b2'], 'SAME'),
             params['g2'], params['be2'])
    sc = conv(x, wsc, params['bsc'], 'VALID')
    out = jnp.maximum(out + sc, 0.0)
    return jnp.transpose(out, (0, 3, 1, 2))


# ---------------------------------------------------------------------------
if __name__ == "__main__":
    N, Cin, H, W = 2, 4, 16, 16      # inchannels=4, outchannels=8, stride=1
    Cout = 8

    key = jax.random.PRNGKey(0)
    ks = jax.random.split(key, 7)
    params = {
        # conv1: PyTorch weight [Cout, Cin, 1, 1] stored transposed as [Cin, Cout]
        'w1':  jax.random.normal(ks[0], (Cin, Cout), jnp.float32) * 0.1,
        'b1':  jax.random.normal(ks[1], (1, Cout), jnp.float32) * 0.1,
        'g1':  jnp.ones((1, Cout), jnp.float32),     # BN default affine
        'be1': jnp.zeros((1, Cout), jnp.float32),
        # conv2: PyTorch weight [Cout, Cout, 3, 3] stored HWIO as [3, 3, Cout, Cout]
        'w2':  jax.random.normal(ks[2], (3, 3, Cout, Cout), jnp.float32) * 0.1,
        'b2':  jax.random.normal(ks[3], (1, Cout), jnp.float32) * 0.1,
        'g2':  jnp.ones((1, Cout), jnp.float32),
        'be2': jnp.zeros((1, Cout), jnp.float32),
        # conv1x1 shortcut projection (present because inchannels != outchannels).
        # If inchannels == outchannels, pass wsc=eye(C), bsc=0 (identity shortcut).
        'wsc': jax.random.normal(ks[4], (Cin, Cout), jnp.float32) * 0.1,
        'bsc': jax.random.normal(ks[5], (1, Cout), jnp.float32) * 0.1,
    }
    x = jax.random.normal(ks[6], (N, Cin, H, W), jnp.float32)

    prep = prepare_params(params, N, H, W)
    out = jax.block_until_ready(residual_block1_forward(x, prep))
    ref = ref_forward(x, params)

    assert out.shape == (N, Cout, H, W), out.shape
    assert jnp.allclose(out, ref, atol=1e-4, rtol=1e-4), \
        float(jnp.max(jnp.abs(out - ref)))
    print("KERNEL_OK")
</pallas_src>

<mosaic_0001>
module attributes {stable_mosaic.version = 11 : i64} {
  func.func @kernel(%arg0: memref<32x64xf32, #tpu.memory_space<vmem>>, %arg1: memref<64x256xf32, #tpu.memory_space<vmem>>, %arg2: memref<384x128xf32, #tpu.memory_space<vmem>>, %arg3: memref<8x128xf32, #tpu.memory_space<vmem>>, %arg4: memref<128x128xf32, #tpu.memory_space<vmem>>, %arg5: memref<32x128xf32, #tpu.memory_space<vmem>>) attributes {dimension_semantics = [], scalar_prefetch = 0 : i64, scratch_operands = 0 : i64, tpu.core_type = #tpu.core_type<tc>} {
    %c0 = arith.constant 0 : index
    %c0_0 = arith.constant 0 : index
    %0 = vector.load %arg0[%c0, %c0_0] : memref<32x64xf32, #tpu.memory_space<vmem>>, vector<32x64xf32>
    %c0_1 = arith.constant 0 : index
    %c0_2 = arith.constant 0 : index
    %1 = vector.load %arg4[%c0_1, %c0_2] : memref<128x128xf32, #tpu.memory_space<vmem>>, vector<128x128xf32>
    %c0_3 = arith.constant 0 : index
    %c0_4 = arith.constant 0 : index
    %2 = vector.load %arg3[%c0_3, %c0_4] : memref<8x128xf32, #tpu.memory_space<vmem>>, vector<8x128xf32>
    %3 = vector.extract_strided_slice %2 {offsets = [0, 0], sizes = [1, 128], strides = [1, 1]} : vector<8x128xf32> to vector<1x128xf32>
    %4 = vector.extract_strided_slice %2 {offsets = [1, 0], sizes = [1, 128], strides = [1, 1]} : vector<8x128xf32> to vector<1x128xf32>
    %5 = vector.extract_strided_slice %2 {offsets = [2, 0], sizes = [1, 128], strides = [1, 1]} : vector<8x128xf32> to vector<1x128xf32>
    %6 = vector.extract_strided_slice %2 {offsets = [3, 0], sizes = [1, 128], strides = [1, 1]} : vector<8x128xf32> to vector<1x128xf32>
    %7 = vector.extract_strided_slice %2 {offsets = [4, 0], sizes = [1, 128], strides = [1, 1]} : vector<8x128xf32> to vector<1x128xf32>
    %c0_5 = arith.constant 0 : index
    %c0_6 = arith.constant 0 : index
    %8 = vector.load %arg1[%c0_5, %c0_6] : memref<64x256xf32, #tpu.memory_space<vmem>>, vector<64x256xf32>
    %cst = arith.constant dense<0.000000e+00> : vector<32x256xf32>
    %9 = tpu.matmul %0, %8, %cst {dimension_numbers = #tpu.dot_dimension_numbers<[1], [0], [0], [1], [0, 0, 1, 1], [], []>} : vector<32x64xf32>, vector<64x256xf32>, vector<32x256xf32> -> vector<32x256xf32>
    %10 = vector.extract_strided_slice %9 {offsets = [0, 0], sizes = [32, 128], strides = [1, 1]} : vector<32x256xf32> to vector<32x128xf32>
    %11 = arith.mulf %10, %10 : vector<32x128xf32>
    %12 = vector.shape_cast %10 : vector<32x128xf32> to vector<1x32x128xf32>
    %13 = vector.shape_cast %11 : vector<32x128xf32> to vector<1x32x128xf32>
    %14 = tpu.concatenate %12, %13 in 0 : vector<1x32x128xf32>, vector<1x32x128xf32> -> vector<2x32x128xf32>
    %cst_7 = arith.constant dense<0.000000e+00> : vector<2x128xf32>
    %15 = vector.multi_reduction <add>, %14, %cst_7 [1] : vector<2x32x128xf32> to vector<2x128xf32>
    %cst_8 = arith.constant dense<0.000000e+00> : vector<2x128xf32>
    %16 = tpu.matmul %15, %1, %cst_8 {dimension_numbers = #tpu.dot_dimension_numbers<[1], [0], [0], [1], [0, 0, 1, 1], [], []>} : vector<2x128xf32>, vector<128x128xf32>, vector<2x128xf32> -> vector<2x128xf32>
    %17 = vector.extract_strided_slice %16 {offsets = [0, 0], sizes = [1, 128], strides = [1, 1]} : vector<2x128xf32> to vector<1x128xf32>
    %18 = vector.extract_strided_slice %16 {offsets = [1, 0], sizes = [1, 128], strides = [1, 1]} : vector<2x128xf32> to vector<1x128xf32>
    %19 = arith.mulf %17, %17 : vector<1x128xf32>
    %20 = arith.subf %18, %19 : vector<1x128xf32>
    %21 = vector.broadcast %17 : vector<1x128xf32> to vector<32x128xf32>
    %22 = arith.subf %10, %21 : vector<32x128xf32>
    %cst_9 = arith.constant 9.99999974E-6 : f32
    %23 = vector.broadcast %cst_9 : f32 to vector<1x128xf32>
    %24 = arith.addf %20, %23 : vector<1x128xf32>
    %25 = math.rsqrt %24 : vector<1x128xf32>
    %26 = vector.broadcast %25 : vector<1x128xf32> to vector<32x128xf32>
    %27 = arith.mulf %22, %26 : vector<32x128xf32>
    %28 = vector.broadcast %3 : vector<1x128xf32> to vector<32x128xf32>
    %29 = arith.mulf %27, %28 : vector<32x128xf32>
    %30 = vector.broadcast %4 : vector<1x128xf32> to vector<32x128xf32>
    %31 = arith.addf %29, %30 : vector<32x128xf32>
    %cst_10 = arith.constant 0.000000e+00 : f32
    %32 = vector.broadcast %cst_10 : f32 to vector<32x128xf32>
    %33 = arith.maximumf %31, %32 : vector<32x128xf32>
    %34 = vector.extract_strided_slice %9 {offsets = [0, 128], sizes = [32, 128], strides = [1, 1]} : vector<32x256xf32> to vector<32x128xf32>
    %35 = vector.broadcast %7 : vector<1x128xf32> to vector<32x128xf32>
    %36 = arith.addf %34, %35 : vector<32x128xf32>
    %37 = tpu.iota {dimensions = array<i32: 0>} : vector<32x128xi32>
    %c16_i32 = arith.constant 16 : i32
    %c0_i32 = arith.constant 0 : i32
    %38 = arith.cmpi eq, %c16_i32, %c0_i32 : i32
    %c1_i32 = arith.constant 1 : i32
    %39 = arith.select %38, %c1_i32, %c16_i32 : i32
    %40 = vector.broadcast %39 : i32 to vector<32x128xi32>
    %41 = arith.remsi %37, %40 : vector<32x128xi32>
    %c0_i32_11 = arith.constant 0 : i32
    %42 = vector.broadcast %c0_i32_11 : i32 to vector<32x128xi32>
    %43 = arith.cmpi ne, %41, %42 : vector<32x128xi32>
    %c0_i32_12 = arith.constant 0 : i32
    %44 = vector.broadcast %c0_i32_12 : i32 to vector<32x128xi32>
    %45 = arith.cmpi slt, %41, %44 : vector<32x128xi32>
    %c0_i32_13 = arith.constant 0 : i32
    %46 = arith.cmpi slt, %39, %c0_i32_13 : i32
    %47 = vector.broadcast %46 : i1 to vector<32x128xi1>
    %48 = vector.broadcast %47 : vector<32x128xi1> to vector<32x128xi1>
    %49 = arith.xori %45, %48 : vector<32x128xi1>
    %50 = arith.andi %49, %43 : vector<32x128xi1>
    %51 = vector.broadcast %39 : i32 to vector<32x128xi32>
    %52 = arith.addi %41, %51 : vector<32x128xi32>
    %53 = arith.select %50, %52, %41 : vector<32x128xi1>, vector<32x128xi32>
    %c0_i32_14 = arith.constant 0 : i32
    %54 = vector.broadcast %c0_i32_14 : i32 to vector<32x128xi32>
    %55 = arith.cmpi eq, %53, %54 : vector<32x128xi32>
    %c1_i32_15 = arith.constant 1 : i32
    %56 = tpu.dynamic_rotate %33 by %c1_i32_15 dim 0 : vector<32x128xf32>, i32 -> vector<32x128xf32>
    %cst_16 = arith.constant 0.000000e+00 : f32
    %57 = vector.broadcast %cst_16 : f32 to vector<32x128xf32>
    %58 = arith.select %55, %57, %56 : vector<32x128xi1>, vector<32x128xf32>
    %c16_i32_17 = arith.constant 16 : i32
    %c0_i32_18 = arith.constant 0 : i32
    %59 = arith.cmpi eq, %c16_i32_17, %c0_i32_18 : i32
    %c1_i32_19 = arith.constant 1 : i32
    %60 = arith.select %59, %c1_i32_19, %c16_i32_17 : i32
    %61 = vector.broadcast %60 : i32 to vector<32x128xi32>
    %62 = arith.remsi %37, %61 : vector<32x128xi32>
    %c0_i32_20 = arith.constant 0 : i32
    %63 = vector.broadcast %c0_i32_20 : i32 to vector<32x128xi32>
    %64 = arith.cmpi ne, %62, %63 : vector<32x128xi32>
    %c0_i32_21 = arith.constant 0 : i32
    %65 = vector.broadcast %c0_i32_21 : i32 to vector<32x128xi32>
    %66 = arith.cmpi slt, %62, %65 : vector<32x128xi32>
    %c0_i32_22 = arith.constant 0 : i32
    %67 = arith.cmpi slt, %60, %c0_i32_22 : i32
    %68 = vector.broadcast %67 : i1 to vector<32x128xi1>
    %69 = vector.broadcast %68 : vector<32x128xi1> to vector<32x128xi1>
    %70 = arith.xori %66, %69 : vector<32x128xi1>
    %71 = arith.andi %70, %64 : vector<32x128xi1>
    %72 = vector.broadcast %60 : i32 to vector<32x128xi32>
    %73 = arith.addi %62, %72 : vector<32x128xi32>
    %74 = arith.select %71, %73, %62 : vector<32x128xi1>, vector<32x128xi32>
    %c15_i32 = arith.constant 15 : i32
    %75 = vector.broadcast %c15_i32 : i32 to vector<32x128xi32>
    %76 = arith.cmpi eq, %74, %75 : vector<32x128xi32>
    %c31_i32 = arith.constant 31 : i32
    %77 = tpu.dynamic_rotate %33 by %c31_i32 dim 0 : vector<32x128xf32>, i32 -> vector<32x128xf32>
    %cst_23 = arith.constant 0.000000e+00 : f32
    %78 = vector.broadcast %cst_23 : f32 to vector<32x128xf32>
    %79 = arith.select %76, %78, %77 : vector<32x128xi1>, vector<32x128xf32>
    %80 = tpu.concatenate %58, %33, %79 in 1 : vector<32x128xf32>, vector<32x128xf32>, vector<32x128xf32> -> vector<32x384xf32>
    %c0_24 = arith.constant 0 : index
    %c0_25 = arith.constant 0 : index
    %81 = vector.load %arg2[%c0_24, %c0_25] : memref<384x128xf32, #tpu.memory_space<vmem>>, vector<384x128xf32>
    %cst_26 = arith.constant dense<0.000000e+00> : vector<32x128xf32>
    %82 = tpu.matmul %80, %81, %cst_26 {dimension_numbers = #tpu.dot_dimension_numbers<[1], [0], [0], [1], [0, 0, 1, 1], [], []>} : vector<32x384xf32>, vector<384x128xf32>, vector<32x128xf32> -> vector<32x128xf32>
    %83 = arith.mulf %82, %82 : vector<32x128xf32>
    %84 = vector.shape_cast %82 : vector<32x128xf32> to vector<1x32x128xf32>
    %85 = vector.shape_cast %83 : vector<32x128xf32> to vector<1x32x128xf32>
    %86 = tpu.concatenate %84, %85 in 0 : vector<1x32x128xf32>, vector<1x32x128xf32> -> vector<2x32x128xf32>
    %cst_27 = arith.constant dense<0.000000e+00> : vector<2x128xf32>
    %87 = vector.multi_reduction <add>, %86, %cst_27 [1] : vector<2x32x128xf32> to vector<2x128xf32>
    %cst_28 = arith.constant dense<0.000000e+00> : vector<2x128xf32>
    %88 = tpu.matmul %87, %1, %cst_28 {dimension_numbers = #tpu.dot_dimension_numbers<[1], [0], [0], [1], [0, 0, 1, 1], [], []>} : vector<2x128xf32>, vector<128x128xf32>, vector<2x128xf32> -> vector<2x128xf32>
    %89 = vector.extract_strided_slice %88 {offsets = [0, 0], sizes = [1, 128], strides = [1, 1]} : vector<2x128xf32> to vector<1x128xf32>
    %90 = vector.extract_strided_slice %88 {offsets = [1, 0], sizes = [1, 128], strides = [1, 1]} : vector<2x128xf32> to vector<1x128xf32>
    %91 = arith.mulf %89, %89 : vector<1x128xf32>
    %92 = arith.subf %90, %91 : vector<1x128xf32>
    %93 = vector.broadcast %89 : vector<1x128xf32> to vector<32x128xf32>
    %94 = arith.subf %82, %93 : vector<32x128xf32>
    %cst_29 = arith.constant 9.99999974E-6 : f32
    %95 = vector.broadcast %cst_29 : f32 to vector<1x128xf32>
    %96 = arith.addf %92, %95 : vector<1x128xf32>
    %97 = math.rsqrt %96 : vector<1x128xf32>
    %98 = vector.broadcast %97 : vector<1x128xf32> to vector<32x128xf32>
    %99 = arith.mulf %94, %98 : vector<32x128xf32>
    %100 = vector.broadcast %5 : vector<1x128xf32> to vector<32x128xf32>
    %101 = arith.mulf %99, %100 : vector<32x128xf32>
    %102 = vector.broadcast %6 : vector<1x128xf32> to vector<32x128xf32>
    %103 = arith.addf %101, %102 : vector<32x128xf32>
    %104 = arith.addf %103, %36 : vector<32x128xf32>
    %cst_30 = arith.constant 0.000000e+00 : f32
    %105 = vector.broadcast %cst_30 : f32 to vector<32x128xf32>
    %106 = arith.maximumf %104, %105 : vector<32x128xf32>
    %c0_31 = arith.constant 0 : index
    %c0_32 = arith.constant 0 : index
    %107 = vector.load %arg5[%c0_31, %c0_32] : memref<32x128xf32, #tpu.memory_space<vmem>>, vector<32x128xf32>
    tpu.vector_store %arg5[%c0_31, %c0_32], %106 {strides = array<i32>} : memref<32x128xf32, #tpu.memory_space<vmem>>, vector<32x128xf32>,
    return
  }
}

</mosaic_0001>

<bundles_post_ra>
// kernel: residual_block1_forward.1
= control target key start
LH: loop header
LB: loop body
LE: loop exit
PB: predicated region body
PF: predicated region fallthrough
CT: control target
= control target key end

     0   :  { %10 = vsyncpa [#allocation3], 0  ;;  %s610_s21 = smov [#allocation2]   ;;  %s611_s23 = smov 128   ;;  %s942_s0 = inlined_call_operand.vmem [shape: f32[32,64], index: 0, kind: input, shape index: {}]   ;;  %s943_s1 = inlined_call_operand.vmem [shape: f32[64,256], index: 1, kind: input, shape index: {}]   ;;  %s944_s2 = inlined_call_operand.vmem [shape: f32[384,128], index: 2, kind: input, shape index: {}]   ;;  %s945_s3 = inlined_call_operand.vmem [shape: f32[8,128], index: 3, kind: input, shape index: {}]   ;;  %s946_s4 = inlined_call_operand.hbm [shape: f32[128,128], index: 4, kind: input, shape index: {}]   ;;  %s947_s5 = inlined_call_operand.vmem [shape: f32[32,128], index: 5, kind: output, shape index: {}]  }
   0x1   :  { %s23_s20 = sshll.u32 %s946_s4, 4  ;;  %s25_s22 = sshll.u32 %s610_s21, 4  ;;  %s24_s20 = int_to_ptr.hbm [resolvable:$true] %s23_s20  ;;  %s26_s22 = int_to_ptr.vmem [resolvable:$true] %s25_s22 }
   0x2   :  { %s612_s24 = smov 8  }
   0x3   :  { %31 = dma.hbm_to_vmem [thread:$0]  %s24_s20, 2048, %s26_s22, [#allocation3], %s611_s23, %s611_s23, %s612_s24  }
   0x4   :  { %608 = dma.done.wait [#allocation3], 2048  }
   0x5   :  { %609 = vsyncadd [#allocation3], 4294965248  ;;  %v71_v0 = vld [vmem:[%s943_s1 + $0x70] sm:$0xff]  ;;  %v69_v1 = vld [vmem:[%s943_s1 + $0x60] sm:$0xff]  ;;  %vm73_vm0 = vcmask 523264   ;;  %vm168_vm1 = vcmask 1041409  }
   0x6   :  { %94 = vmatpush.msra.mxu0 %v71_v0  ;;  %v67_v2 = vld [vmem:[%s943_s1 + $0x50] sm:$0xff]  ;;  %v65_v3 = vld [vmem:[%s943_s1 + $0x40] sm:$0xff]  ;;  %v680_v9 = vld [vmem:[%s942_s0 + $0x8] sm:$0xff] }
   0x7   :  { %v63_v4 = vld [vmem:[%s943_s1 + $0x30] sm:$0xff]  ;;  %v61_v5 = vld [vmem:[%s943_s1 + $0x20] sm:$0xff]  ;;  %v694_v11 = vld [vmem:[%s942_s0 + $0x18] sm:$0xff] }
   0x8   :  { %95 = vmatpush.msra.mxu0 %v69_v1  ;;  %v59_v6 = vld [vmem:[%s943_s1 + $0x10] sm:$0xff]  ;;  %v57_v7 = vld [vmem:[%s943_s1] sm:$0xff]  ;;  %v55_v12 = vld [vmem:[#allocation2 + $0x78] sm:$0xff] }
   0x9   :  { %v673_v8 = vld [vmem:[%s942_s0] sm:$0xff]  ;;  %v687_v10 = vld [vmem:[%s942_s0 + $0x10] sm:$0xff]  ;;  %171 = vmatpush.msra.mxu2 %v55_v12  ;;  %v53_v14 = vld [vmem:[#allocation2 + $0x68] sm:$0xff] }
   0xa   :  { %96 = vmatpush.msra.mxu0 %v67_v2  ;;  %v54_v13 = vld [vmem:[#allocation2 + $0x70] sm:$0xff]  ;;  %v52_v15 = vld [vmem:[#allocation2 + $0x60] sm:$0xff]  ;;  %v51_v16 = vld [vmem:[#allocation2 + $0x58] sm:$0xff] }
   0xb   :  { %172 = vmatpush.msra.mxu2 %v54_v13  ;;  %v50_v17 = vld [vmem:[#allocation2 + $0x50] sm:$0xff]  ;;  %v49_v18 = vld [vmem:[#allocation2 + $0x48] sm:$0xff]  ;;  %v48_v19 = vld [vmem:[#allocation2 + $0x40] sm:$0xff] }
   0xc   :  { %97 = vmatpush.msra.mxu0 %v65_v3  ;;  %v47_v20 = vld [vmem:[#allocation2 + $0x38] sm:$0xff]  ;;  %v46_v21 = vld [vmem:[#allocation2 + $0x30] sm:$0xff]  ;;  %v45_v22 = vld [vmem:[#allocation2 + $0x28] sm:$0xff] }
   0xd   :  { %173 = vmatpush.msra.mxu2 %v53_v14  ;;  %v44_v23 = vld [vmem:[#allocation2 + $0x20] sm:$0xff]  ;;  %v43_v25 = vld [vmem:[#allocation2 + $0x18] sm:$0xff]  ;;  %v42_v26 = vld [vmem:[#allocation2 + $0x10] sm:$0xff] }
   0xe   :  { %98 = vmatpush.msra.mxu0 %v63_v4  ;;  %v41_v27 = vld [vmem:[#allocation2 + $0x8] sm:$0xff]  ;;  %v40_v28 = vld [vmem:[#allocation2] sm:$0xff]  ;;  %v72_v30 = vld [vmem:[%s943_s1 + $0x78] sm:$0xff] }
   0xf   :  { %174 = vmatpush.msra.mxu2 %v52_v15  ;;  %v70_v31 = vld [vmem:[%s943_s1 + $0x68] sm:$0xff]  ;;  %123 = vmatpush.msra.mxu1 %v72_v30  ;;  %v68_v32 = vld [vmem:[%s943_s1 + $0x58] sm:$0xff]  ;;  %v353_v0 = vld [vmem:[%s944_s2 + $0xf0] sm:$0xff] }
  0x10   :  { %99 = vmatpush.msra.mxu0 %v61_v5  ;;  %v66_v33 = vld [vmem:[%s943_s1 + $0x48] sm:$0xff]  ;;  %v64_v59 = vld [vmem:[%s943_s1 + $0x38] sm:$0xff]  ;;  %v337_v4 = vld [vmem:[%s944_s2 + $0x70] sm:$0xff] }
  0x11   :  { %175 = vmatpush.msra.mxu2 %v51_v16  ;;  %124 = vmatpush.msra.mxu1 %v70_v31  ;;  %v62_v60 = vld [vmem:[%s943_s1 + $0x28] sm:$0xff]  ;;  %v60_v61 = vld [vmem:[%s943_s1 + $0x18] sm:$0xff]  ;;  %v369_v5 = vld [vmem:[%s944_s2 + $0x170] sm:$0xff] }
  0x12   :  { %100 = vmatpush.msra.mxu0 %v59_v6  ;;  %v354_v62 = vld [vmem:[%s944_s2 + $0xf8] sm:$0xff]  ;;  %v58_v63 = vld [vmem:[%s943_s1 + $0x8] sm:$0xff]  ;;  %v351_v6 = vld [vmem:[%s944_s2 + $0xe0] sm:$0xff] }
  0x13   :  { %176 = vmatpush.msra.mxu2 %v50_v17  ;;  %125 = vmatpush.msra.mxu1 %v68_v32  ;;  %v338_v1 = vld [vmem:[%s944_s2 + $0x78] sm:$0xff]  ;;  %v352_v3 = vld [vmem:[%s944_s2 + $0xe8] sm:$0xff]  ;;  %v361_v32 = vld [vmem:[%s944_s2 + $0x130] sm:$0xff] }
  0x14   :  { %101 = vmatpush.msra.mxu0 %v57_v7  ;;  %v370_v2 = vld [vmem:[%s944_s2 + $0x178] sm:$0xff]  ;;  %371 = vmatpush.msra.mxu3 %v338_v1  ;;  %v336_v7 = vld [vmem:[%s944_s2 + $0x68] sm:$0xff] }
  0x15   :  { %557 = vmatmul.msk.f32.vlgmr.msra.gmra.mxu0 %vm73_vm0, %v673_v8  ;;  %177 = vmatpush.msra.mxu2 %v49_v18  ;;  %v362_v30 = vld [vmem:[%s944_s2 + $0x138] sm:$0xff]  ;;  %v344_v31 = vld [vmem:[%s944_s2 + $0xa8] sm:$0xff] }
  0x16   :  { %126 = vmatpush.msra.mxu1 %v66_v33  ;;  %400 = vmatpush.msrb.mxu0 %v354_v62  ;;  %v343_v33 = vld [vmem:[%s944_s2 + $0xa0] sm:$0xff] }
  0x17   :  { %178 = vmatpush.msra.mxu2 %v48_v19  ;;  %372 = vmatpush.msra.mxu3 %v337_v4  ;;  %v898_v62 = vld [vmem:[%s945_s3] sm:$0xff] }
  0x18   :  { %127 = vmatpush.msra.mxu1 %v64_v59  ;;  %401 = vmatpush.msrb.mxu0 %v353_v0  ;;  %v236_v0 = vlaneseq }
  0x19   :  { %179 = vmatpush.msra.mxu2 %v47_v20  ;;  %373 = vmatpush.msra.mxu3 %v336_v7 }
  0x1a   :  { %128 = vmatpush.msra.mxu1 %v62_v60  ;;  %402 = vmatpush.msrb.mxu0 %v352_v3  ;;  %v217_v3 = vperm.slane %v898_v62, 0 }
  0x1b   :  { %180 = vmatpush.msra.mxu2 %v46_v21 }
  0x1c   :  { %129 = vmatpush.msra.mxu1 %v60_v61  ;;  %403 = vmatpush.msrb.mxu0 %v351_v6 }
  0x1d   :  { %558 = vmatmul.msk.f32.gmra.mxu0 %vm73_vm0, %v680_v9  ;;  %181 = vmatpush.msra.mxu2 %v45_v22 }
  0x1e   :  { %130 = vmatpush.msra.mxu1 %v58_v63 }
  0x1f   :  { %182 = vmatpush.msra.mxu2 %v44_v23  ;;  %561 = vmatmul.msk.f32.vlgmr.msra.gmra.mxu1 %vm73_vm0, %v673_v8  ;;  %v368_v8 = vld [vmem:[%s944_s2 + $0x168] sm:$0xff] }
  0x20   :  { %429 = vmatpush.msrb.mxu1 %v370_v2 }
  0x21   :  { %183 = vmatpush.msra.mxu2 %v43_v25 }
  0x22   :  { %430 = vmatpush.msrb.mxu1 %v369_v5 }
  0x23   :  { %184 = vmatpush.msra.mxu2 %v42_v26 }
  0x24   :  { %431 = vmatpush.msrb.mxu1 %v368_v8  ;;  %v222_v8 = vperm.slane %v898_v62, 1 }
  0x25   :  { %559 = vmatmul.msk.f32.gmra.mxu0 %vm73_vm0, %v687_v10  ;;  %185 = vmatpush.msra.mxu2 %v41_v27 }
  0x27   :  { %186 = vmatpush.msra.mxu2 %v40_v28  ;;  %562 = vmatmul.msk.f32.gmra.mxu1 %vm73_vm0, %v680_v9  ;;  %v333_v9 = vld [vmem:[%s944_s2 + $0x50] sm:$0xff] }
  0x29   :  { %484 = vmatpush.msrb.mxu2 %v55_v12  ;;  %v350_v12 = vld [vmem:[%s944_s2 + $0xd8] sm:$0xff] }
  0x2a   :  { %404 = vmatpush.msrb.mxu0 %v350_v12  ;;  %v237_v12 = vshrl.u32 %v236_v0, 7 }
  0x2b   :  { %485 = vmatpush.msrb.mxu2 %v54_v13  ;;  %v335_v13 = vld [vmem:[%s944_s2 + $0x60] sm:$0xff] }
  0x2c   :  { %374 = vmatpush.msra.mxu3 %v335_v13  ;;  %vm297_vm5 = vcmp.lt.s32.totalorder %v237_v12, 1  ;;  %vm314_vm7 = vcmp.lt.s32.totalorder %v237_v12, 7 }
  0x2d   :  { %560 = vmatmul.msk.f32.gmra.mxu0 %vm73_vm0, %v694_v11  ;;  %486 = vmatpush.msrb.mxu2 %v53_v14  ;;  %v367_v14 = vld [vmem:[%s944_s2 + $0x160] sm:$0xff] }
  0x2e   :  { %432 = vmatpush.msrb.mxu1 %v367_v14 }
  0x2f   :  { %487 = vmatpush.msrb.mxu2 %v52_v15  ;;  %v349_v15 = vld [vmem:[%s944_s2 + $0xd0] sm:$0xff]  ;;  %563 = vmatmul.msk.f32.gmra.mxu1 %vm73_vm0, %v687_v10 }
  0x30   :  { %405 = vmatpush.msrb.mxu0 %v349_v15  ;;  %v329_v10 = vld [vmem:[%s944_s2 + $0x30] sm:$0xff] }
  0x31   :  { %488 = vmatpush.msrb.mxu2 %v51_v16  ;;  %v334_v16 = vld [vmem:[%s944_s2 + $0x58] sm:$0xff] }
  0x32   :  { %375 = vmatpush.msra.mxu3 %v334_v16 }
  0x33   :  { %489 = vmatpush.msrb.mxu2 %v50_v17  ;;  %v366_v17 = vld [vmem:[%s944_s2 + $0x158] sm:$0xff] }
  0x34   :  { %433 = vmatpush.msrb.mxu1 %v366_v17  ;;  %376 = vmatpush.msra.mxu3 %v333_v9 }
  0x35   :  { %490 = vmatpush.msrb.mxu2 %v49_v18  ;;  %v348_v18 = vld [vmem:[%s944_s2 + $0xc8] sm:$0xff] }
  0x36   :  { %406 = vmatpush.msrb.mxu0 %v348_v18 }
  0x37   :  { %491 = vmatpush.msrb.mxu2 %v48_v19  ;;  %v365_v19 = vld [vmem:[%s944_s2 + $0x150] sm:$0xff]  ;;  %564 = vmatmul.msk.f32.gmra.mxu1 %vm73_vm0, %v694_v11  ;;  %v324_v11 = vld [vmem:[%s944_s2 + $0x8] sm:$0xff] }
  0x38   :  { %434 = vmatpush.msrb.mxu1 %v365_v19  ;;  %v245_v19 = vand.u32 15, %v237_v12 }
  0x39   :  { %492 = vmatpush.msrb.mxu2 %v47_v20  ;;  %v347_v20 = vld [vmem:[%s944_s2 + $0xc0] sm:$0xff] }
  0x3a   :  { %407 = vmatpush.msrb.mxu0 %v347_v20  ;;  %vm573_vm6 = vcmp.ne.s32.totalorder %v245_v19, 0 }
  0x3b   :  { %493 = vmatpush.msrb.mxu2 %v46_v21  ;;  %v332_v21 = vld [vmem:[%s944_s2 + $0x48] sm:$0xff] }
  0x3c   :  { %377 = vmatpush.msra.mxu3 %v332_v21 }
  0x3d   :  { %494 = vmatpush.msrb.mxu2 %v45_v22  ;;  %v364_v22 = vld [vmem:[%s944_s2 + $0x148] sm:$0xff] }
  0x3e   :  { %435 = vmatpush.msrb.mxu1 %v364_v22 }
  0x3f   :  { %495 = vmatpush.msrb.mxu2 %v44_v23  ;;  %v346_v23 = vld [vmem:[%s944_s2 + $0xb8] sm:$0xff] }
  0x40   :  { %408 = vmatpush.msrb.mxu0 %v346_v23 }
  0x41   :  { %496 = vmatpush.msrb.mxu2 %v43_v25  ;;  %v331_v25 = vld [vmem:[%s944_s2 + $0x40] sm:$0xff] }
  0x42   :  { %378 = vmatpush.msra.mxu3 %v331_v25 }
  0x43   :  { %497 = vmatpush.msrb.mxu2 %v42_v26  ;;  %v363_v26 = vld [vmem:[%s944_s2 + $0x140] sm:$0xff] }
  0x44   :  { %436 = vmatpush.msrb.mxu1 %v363_v26 }
  0x45   :  { %498 = vmatpush.msrb.mxu2 %v41_v27  ;;  %v345_v27 = vld [vmem:[%s944_s2 + $0xb0] sm:$0xff] }
  0x46   :  { %409 = vmatpush.msrb.mxu0 %v345_v27  ;;  %437 = vmatpush.msrb.mxu1 %v362_v30 }
  0x47   :  { %499 = vmatpush.msrb.mxu2 %v40_v28  ;;  %v330_v28 = vld [vmem:[%s944_s2 + $0x38] sm:$0xff] }
  0x48   :  { %379 = vmatpush.msra.mxu3 %v330_v28  ;;  %410 = vmatpush.msrb.mxu0 %v344_v31 }
  0x49   :  { %438 = vmatpush.msrb.mxu1 %v361_v32 }
  0x4a   :  { %380 = vmatpush.msra.mxu3 %v329_v10  ;;  %411 = vmatpush.msrb.mxu0 %v343_v33 }
  0x92   :  { %v698_v24 = vpop.f32.mrf.mxu0 }
  0x93   :  { %v144_v36 = vmul.f32 %v698_v24, %v698_v24 }
  0x9a   :  { %v700_v29 = vpop.f32.mrf.mxu0 }
  0x9b   :  { %v145_v35 = vmul.f32 %v700_v29, %v700_v29  ;;  %v148_v37 = vadd.f32 %v700_v29, %v698_v24 }
  0x9d   :  { %v157_v39 = vadd.f32 %v145_v35, %v144_v36  ;;  %v328_v35 = vld [vmem:[%s944_s2 + $0x28] sm:$0xff] }
  0x9e   :  { %v360_v36 = vld [vmem:[%s944_s2 + $0x128] sm:$0xff]  ;;  %381 = vmatpush.msra.mxu3 %v328_v35 }
  0x9f   :  { %439 = vmatpush.msrb.mxu1 %v360_v36 }
  0xa2   :  { %v714_v34 = vpop.f32.mrf.mxu0 }
  0xa3   :  { %v146_v38 = vmul.f32 %v714_v34, %v714_v34  ;;  %v149_v40 = vadd.f32 %v148_v37, %v714_v34  ;;  %v342_v37 = vld [vmem:[%s944_s2 + $0x98] sm:$0xff] }
  0xa4   :  { %412 = vmatpush.msrb.mxu0 %v342_v37  ;;  %v239_v37 = vadd.s32 16, %v237_v12 }
  0xa5   :  { %v158_v42 = vadd.f32 %v157_v39, %v146_v38  ;;  %v327_v38 = vld [vmem:[%s944_s2 + $0x20] sm:$0xff] }
  0xa6   :  { %v359_v39 = vld [vmem:[%s944_s2 + $0x120] sm:$0xff]  ;;  %382 = vmatpush.msra.mxu3 %v327_v38 }
  0xa7   :  { %440 = vmatpush.msrb.mxu1 %v359_v39 }
  0xaa   :  { %v725_v41 = vpop.f32.mrf.mxu0 }
  0xab   :  { %v147_v43 = vmul.f32 %v725_v41, %v725_v41  ;;  %v150_v44 = vadd.f32 %v149_v40, %v725_v41  ;;  %v341_v40 = vld [vmem:[%s944_s2 + $0x90] sm:$0xff] }
  0xac   :  { %413 = vmatpush.msrb.mxu0 %v341_v40  ;;  %v259_v40 = vand.u32 15, %v239_v37 }
  0xad   :  { %v151_v45 = vrot.slane %v150_v44, 4  ;;  %v159_v46 = vadd.f32 %v158_v42, %v147_v43  ;;  %v326_v42 = vld [vmem:[%s944_s2 + $0x18] sm:$0xff] }
  0xae   :  { %v358_v43 = vld [vmem:[%s944_s2 + $0x118] sm:$0xff]  ;;  %383 = vmatpush.msra.mxu3 %v326_v42  ;;  %vm574_vm9 = vcmp.ne.s32.totalorder %v259_v40, 0 }
  0xaf   :  { %v152_v47 = vadd.f32 %v151_v45, %v150_v44  ;;  %v160_v48 = vrot.slane %v159_v46, 4  ;;  %v340_v44 = vld [vmem:[%s944_s2 + $0x88] sm:$0xff]  ;;  %441 = vmatpush.msrb.mxu1 %v358_v43 }
  0xb0   :  { %414 = vmatpush.msrb.mxu0 %v340_v44  ;;  %v240_v44 = vadd.s32 24, %v237_v12 }
  0xb1   :  { %v153_v49 = vrot.slane %v152_v47, 2  ;;  %v161_v50 = vadd.f32 %v160_v48, %v159_v46  ;;  %v325_v46 = vld [vmem:[%s944_s2 + $0x10] sm:$0xff] }
  0xb2   :  { %384 = vmatpush.msra.mxu3 %v325_v46 }
  0xb3   :  { %v154_v51 = vadd.f32 %v153_v49, %v152_v47  ;;  %v162_v52 = vrot.slane %v161_v50, 2  ;;  %v357_v47 = vld [vmem:[%s944_s2 + $0x110] sm:$0xff]  ;;  %v339_v49 = vld [vmem:[%s944_s2 + $0x80] sm:$0xff] }
  0xb4   :  { %442 = vmatpush.msrb.mxu1 %v357_v47  ;;  %415 = vmatpush.msrb.mxu0 %v339_v49  ;;  %v266_v47 = vand.u32 15, %v240_v44 }
  0xb5   :  { %v155_v53 = vrot.slane %v154_v51, 1  ;;  %v163_v54 = vadd.f32 %v162_v52, %v161_v50  ;;  %385 = vmatpush.msra.mxu3 %v324_v11  ;;  %v356_v52 = vld [vmem:[%s944_s2 + $0x108] sm:$0xff]  ;;  %v914_v11 = vpop.f32.mrf.mxu1 }
  0xb6   :  { %443 = vmatpush.msrb.mxu1 %v356_v52  ;;  %vm576_vm10 = vcmp.ne.s32.totalorder %v266_v47, 15 }
  0xb7   :  { %v164_v55 = vrot.slane %v163_v54, 1  ;;  %v156_v56 = vadd.f32 %v155_v53, %v154_v51  ;;  %v323_v53 = vld [vmem:[%s944_s2] sm:$0xff] }
  0xb8   :  { %386 = vmatpush.msra.mxu3 %v323_v53 }
  0xb9   :  { %v165_v57 = vadd.f32 %v164_v55, %v163_v54  ;;  %v355_v54 = vld [vmem:[%s944_s2 + $0x100] sm:$0xff] }
  0xba   :  { %444 = vmatpush.msrb.mxu1 %v355_v54 }
  0xbb   :  { %v169_v58 = vsel %vm168_vm1, %v165_v57, %v156_v56 }
  0xbc   :  { %187 = vmatmul.f32.vlgmr.msra.gmra.mxu2 %v169_v58 }
 0x13f   :  { %v188_v45 = vpop.f32.mrf.mxu2 }
 0x140   :  { %v191_v48 = vmul.f32 %v188_v45, %v188_v45  ;;  %v196_v60 = vperm.slane %v188_v45, 0 }
 0x142   :  { %v193_v50 = vrot.slane %v191_v48, 7  ;;  %v198_v1 = vsub.f32 %v700_v29, %v196_v60  ;;  %v199_v4 = vsub.f32 %v714_v34, %v196_v60  ;;  %v200_v5 = vsub.f32 %v725_v41, %v196_v60 }
 0x143   :  { %v197_v7 = vsub.f32 %v698_v24, %v196_v60  ;;  %v238_v24 = vadd.s32 8, %v237_v12 }
 0x144   :  { %v195_v51 = vsub.f32 %v188_v45, %v193_v50  ;;  %v916_v50 = vpop.f32.mrf.mxu1 }
 0x145   :  { %v252_v33 = vand.u32 15, %v238_v24 }
 0x146   :  { %v201_v55 = vadd.f32 1e-05, %v195_v51 }
 0x147   :  { %vm575_vm8 = vcmp.ne.s32.totalorder %v252_v33, 15 }
 0x148   :  { %580 = vrsqrt.f32 %v201_v55  ;;  %vm208_vm3 = vweird.f32 %v201_v55 }
 0x14c   :  { %v918_v51 = vpop.f32.mrf.mxu1 }
 0x14e   :  { %v581_v56 = vpop.eup %580 }
 0x14f   :  { %v203_v57 = vmul.f32 %v581_v56, %v201_v55  ;;  %vm209_vm2 = vweird.f32 %v581_v56 }
 0x150   :  { %vm210_vm4 = vmor %vm208_vm3, %vm209_vm2 }
 0x151   :  { %v204_v58 = vmul.f32 %v581_v56, %v203_v57 }
 0x153   :  { %v205_v59 = vmul.f32 0.5, %v204_v58 }
 0x154   :  { %v920_v52 = vpop.f32.mrf.mxu1 }
 0x155   :  { %v206_v61 = vsub.f32 1.5, %v205_v59 }
 0x157   :  { %v207_v63 = vmul.f32 %v581_v56, %v206_v61 }
 0x159   :  { %v211_v2 = vsel %vm210_vm4, %v581_v56, %v207_v63 }
 0x15a   :  { %v212_v6 = vperm.slane %v211_v2, 1 }
 0x15c   :  { %v214_v13 = vmul.f32 %v212_v6, %v198_v1  ;;  %v215_v14 = vmul.f32 %v212_v6, %v199_v4  ;;  %v216_v15 = vmul.f32 %v212_v6, %v200_v5  ;;  %v213_v16 = vmul.f32 %v212_v6, %v197_v7 }
 0x15e   :  { %v218_v17 = vmul.f32 %v217_v3, %v213_v16  ;;  %v221_v18 = vmul.f32 %v217_v3, %v216_v15  ;;  %v219_v29 = vmul.f32 %v217_v3, %v214_v13  ;;  %v220_v9 = vmul.f32 %v217_v3, %v215_v14 }
 0x160   :  { %v223_v20 = vadd.f32 %v222_v8, %v218_v17  ;;  %v226_v21 = vadd.f32 %v222_v8, %v221_v18  ;;  %v224_v34 = vadd.f32 %v222_v8, %v219_v29  ;;  %v225_v25 = vadd.f32 %v222_v8, %v220_v9 }
 0x162   :  { %v227_v22 = vmax.f32 %v223_v20, 0.0  ;;  %v230_v41 = vmax.f32 %v226_v21, 0.0  ;;  %v228_v23 = vmax.f32 %v224_v34, 0.0  ;;  %v229_v32 = vmax.f32 %v225_v25, 0.0 }
 0x164   :  { %416 = vmatmul.f32.vlgmr.msrb.gmra.mxu0 %v227_v22  ;;  %v293_v26 = vrot.slane %v227_v22, 7  ;;  %v296_v27 = vrot.slane %v230_v41, 7  ;;  %v310_v28 = vrot.slane %v227_v22, 1  ;;  %v311_v30 = vrot.slane %v228_v23, 1 }
 0x165   :  { %v294_v35 = vrot.slane %v228_v23, 7  ;;  %v312_v36 = vrot.slane %v229_v32, 1  ;;  %v295_v42 = vrot.slane %v229_v32, 7  ;;  %v313_v43 = vrot.slane %v230_v41, 1 }
 0x166   :  { %v301_v31 = vsel %vm297_vm5, %v296_v27, %v293_v26  ;;  %v317_v10 = vsel %vm314_vm7, %v310_v28, %v311_v30 }
 0x167   :  { %566 = vmatmul.msk.f32.vlgmr.msra.gmra.mxu3 %vm573_vm6, %v301_v31  ;;  %445 = vmatmul.f32.vlgmr.msrb.gmra.mxu1 %v317_v10  ;;  %v300_v38 = vsel %vm297_vm5, %v293_v26, %v294_v35  ;;  %v316_v39 = vsel %vm314_vm7, %v311_v30, %v312_v36  ;;  %v299_v45 = vsel %vm297_vm5, %v294_v35, %v295_v42 }
 0x168   :  { %v315_v46 = vsel %vm314_vm7, %v312_v36, %v313_v43  ;;  %v298_v48 = vsel %vm297_vm5, %v295_v42, %v296_v27  ;;  %v318_v49 = vsel %vm314_vm7, %v313_v43, %v310_v28 }
 0x16c   :  { %419 = vmatmul.f32.gmra.mxu0 %v228_v23 }
 0x16f   :  { %390 = vmatmul.f32.gmra.mxu3 %v300_v38  ;;  %570 = vmatmul.msk.f32.gmra.mxu1 %vm575_vm8, %v316_v39 }
 0x174   :  { %422 = vmatmul.f32.gmra.mxu0 %v229_v32 }
 0x177   :  { %568 = vmatmul.msk.f32.gmra.mxu3 %vm574_vm9, %v299_v45  ;;  %451 = vmatmul.f32.gmra.mxu1 %v315_v46 }
 0x17c   :  { %425 = vmatmul.f32.gmra.mxu0 %v230_v41 }
 0x17f   :  { %396 = vmatmul.f32.gmra.mxu3 %v298_v48  ;;  %572 = vmatmul.msk.f32.gmra.mxu1 %vm576_vm10, %v318_v49  ;;  %v530_v48 = vperm.slane %v898_v62, 2 }
 0x1e1   :  { %v417_v53 = vpop.f32.mrf.mxu0 }
 0x1e4   :  { %v446_v54 = vpop.f32.mrf.mxu1 }
 0x1e9   :  { %v420_v56 = vpop.f32.mrf.mxu0 }
 0x1ea   :  { %v388_v55 = vpop.f32.mrf.mxu3 }
 0x1eb   :  { %v418_v0 = vadd.f32 %v417_v53, %v388_v55 }
 0x1ec   :  { %v449_v57 = vpop.f32.mrf.mxu1 }
 0x1ed   :  { %v447_v3 = vadd.f32 %v446_v54, %v418_v0 }
 0x1ef   :  { %v458_v8 = vmul.f32 %v447_v3, %v447_v3 }
 0x1f1   :  { %v423_v59 = vpop.f32.mrf.mxu0 }
 0x1f2   :  { %v391_v58 = vpop.f32.mrf.mxu3 }
 0x1f3   :  { %v421_v60 = vadd.f32 %v420_v56, %v391_v58  ;;  %v231_v56 = vperm.slane %v898_v62, 4 }
 0x1f4   :  { %v452_v61 = vpop.f32.mrf.mxu1 }
 0x1f5   :  { %v450_v2 = vadd.f32 %v449_v57, %v421_v60  ;;  %v535_v57 = vperm.slane %v898_v62, 3 }
 0x1f7   :  { %v459_v5 = vmul.f32 %v450_v2, %v450_v2  ;;  %v462_v12 = vadd.f32 %v450_v2, %v447_v3 }
 0x1f9   :  { %v426_v6 = vpop.f32.mrf.mxu0  ;;  %v471_v16 = vadd.f32 %v459_v5, %v458_v8 }
 0x1fa   :  { %v394_v63 = vpop.f32.mrf.mxu3 }
 0x1fb   :  { %v424_v1 = vadd.f32 %v423_v59, %v394_v63 }
 0x1fc   :  { %v455_v15 = vpop.f32.mrf.mxu1 }
 0x1fd   :  { %v453_v4 = vadd.f32 %v452_v61, %v424_v1 }
 0x1ff   :  { %v460_v13 = vmul.f32 %v453_v4, %v453_v4  ;;  %v463_v17 = vadd.f32 %v462_v12, %v453_v4 }
 0x201   :  { %v472_v29 = vadd.f32 %v471_v16, %v460_v13 }
 0x202   :  { %v397_v7 = vpop.f32.mrf.mxu3 }
 0x203   :  { %v427_v14 = vadd.f32 %v426_v6, %v397_v7  ;;  %v233_v6 = vadd.f32 %v231_v56, %v916_v50 }
 0x205   :  { %v456_v18 = vadd.f32 %v455_v15, %v427_v14 }
 0x207   :  { %v461_v9 = vmul.f32 %v456_v18, %v456_v18  ;;  %v464_v19 = vadd.f32 %v463_v17, %v456_v18 }
 0x209   :  { %v465_v20 = vrot.slane %v464_v19, 4  ;;  %v473_v21 = vadd.f32 %v472_v29, %v461_v9 }
 0x20b   :  { %v466_v34 = vadd.f32 %v465_v20, %v464_v19  ;;  %v474_v22 = vrot.slane %v473_v21, 4 }
 0x20d   :  { %v467_v41 = vrot.slane %v466_v34, 2  ;;  %v475_v23 = vadd.f32 %v474_v22, %v473_v21 }
 0x20f   :  { %v468_v25 = vadd.f32 %v467_v41, %v466_v34  ;;  %v476_v24 = vrot.slane %v475_v23, 2 }
 0x211   :  { %v469_v26 = vrot.slane %v468_v25, 1  ;;  %v477_v27 = vadd.f32 %v476_v24, %v475_v23 }
 0x213   :  { %v478_v28 = vrot.slane %v477_v27, 1  ;;  %v470_v30 = vadd.f32 %v469_v26, %v468_v25 }
 0x215   :  { %v479_v31 = vadd.f32 %v478_v28, %v477_v27 }
 0x217   :  { %v482_v10 = vsel %vm168_vm1, %v479_v31, %v470_v30 }
 0x218   :  { %500 = vmatmul.f32.vlgmr.msrb.gmra.mxu2 %v482_v10 }
 0x29b   :  { %v501_v32 = vpop.f32.mrf.mxu2 }
 0x29c   :  { %v504_v33 = vmul.f32 %v501_v32, %v501_v32  ;;  %v509_v43 = vperm.slane %v501_v32, 0 }
 0x29e   :  { %v506_v35 = vrot.slane %v504_v33, 7  ;;  %v510_v46 = vsub.f32 %v447_v3, %v509_v43  ;;  %v511_v49 = vsub.f32 %v450_v2, %v509_v43  ;;  %v512_v53 = vsub.f32 %v453_v4, %v509_v43 }
 0x29f   :  { %v513_v54 = vsub.f32 %v456_v18, %v509_v43  ;;  %v232_v3 = vadd.f32 %v231_v56, %v914_v11  ;;  %v234_v2 = vadd.f32 %v231_v56, %v918_v51  ;;  %v235_v4 = vadd.f32 %v231_v56, %v920_v52 }
 0x2a0   :  { %v508_v36 = vsub.f32 %v501_v32, %v506_v35 }
 0x2a2   :  { %v514_v37 = vadd.f32 1e-05, %v508_v36 }
 0x2a4   :  { %582 = vrsqrt.f32 %v514_v37  ;;  %vm521_vm12 = vweird.f32 %v514_v37 }
 0x2aa   :  { %v583_v38 = vpop.eup %582 }
 0x2ab   :  { %v516_v39 = vmul.f32 %v583_v38, %v514_v37  ;;  %vm522_vm11 = vweird.f32 %v583_v38 }
 0x2ac   :  { %vm523_vm13 = vmor %vm521_vm12, %vm522_vm11 }
 0x2ad   :  { %v517_v40 = vmul.f32 %v583_v38, %v516_v39 }
 0x2af   :  { %v518_v42 = vmul.f32 0.5, %v517_v40 }
 0x2b1   :  { %v519_v44 = vsub.f32 1.5, %v518_v42 }
 0x2b3   :  { %v520_v45 = vmul.f32 %v583_v38, %v519_v44 }
 0x2b5   :  { %v524_v47 = vsel %vm523_vm13, %v583_v38, %v520_v45 }
 0x2b6   :  { %v525_v55 = vperm.slane %v524_v47, 1 }
 0x2b8   :  { %v526_v58 = vmul.f32 %v525_v55, %v510_v46  ;;  %v527_v59 = vmul.f32 %v525_v55, %v511_v49  ;;  %v528_v60 = vmul.f32 %v525_v55, %v512_v53  ;;  %v529_v61 = vmul.f32 %v525_v55, %v513_v54 }
 0x2ba   :  { %v531_v63 = vmul.f32 %v530_v48, %v526_v58  ;;  %v532_v0 = vmul.f32 %v530_v48, %v527_v59  ;;  %v533_v1 = vmul.f32 %v530_v48, %v528_v60  ;;  %v534_v5 = vmul.f32 %v530_v48, %v529_v61 }
 0x2bc   :  { %v536_v7 = vadd.f32 %v535_v57, %v531_v63  ;;  %v537_v8 = vadd.f32 %v535_v57, %v532_v0  ;;  %v538_v12 = vadd.f32 %v535_v57, %v533_v1  ;;  %v539_v62 = vadd.f32 %v535_v57, %v534_v5 }
 0x2be   :  { %v540_v13 = vadd.f32 %v536_v7, %v232_v3  ;;  %v541_v14 = vadd.f32 %v537_v8, %v233_v6  ;;  %v542_v15 = vadd.f32 %v538_v12, %v234_v2  ;;  %v543_v16 = vadd.f32 %v539_v62, %v235_v4 }
 0x2c0   :  { %v544_v17 = vmax.f32 %v540_v13, 0.0  ;;  %v545_v18 = vmax.f32 %v541_v14, 0.0  ;;  %v546_v29 = vmax.f32 %v542_v15, 0.0  ;;  %v547_v9 = vmax.f32 %v543_v16, 0.0 }
 0x2c2   :  { %548 = vst [vmem:[%s947_s5] sm:$0xff] %v544_v17 }
 0x2c3   :  { %549 = vst [vmem:[%s947_s5 + $0x8] sm:$0xff] %v545_v18 }
 0x2c4   :  { %550 = vst [vmem:[%s947_s5 + $0x10] sm:$0xff] %v546_v29 }
 0x2c5   :  { %551 = vst [vmem:[%s947_s5 + $0x18] sm:$0xff] %v547_v9 }
 0x2c6   :  { %556 = vsyncpa [#allocation3], 1 }

</bundles_post_ra>
